<compile_context>
chip_gen: v6e
topology: v6e:2x2x1
jax: 0.10.0
libtpu: 0.0.40
codegen_flags: <defaults>
</compile_context>

<pallas_src>
import jax
import jax.numpy as jnp
from jax.experimental import pallas as pl
from jax.experimental.pallas import tpu as pltpu


def _round_up(x: int, m: int) -> int:
    return ((x + m - 1) // m) * m


# ----------------------------- Pallas kernel -----------------------------
def _linear_kernel(x_ref, w_ref, b_ref, o_ref, acc_ref):
    # x_ref: (tm, tk) bf16   w_ref: (tk, tn) bf16   b_ref: (1, tn) f32
    # o_ref: (tm, tn) out dtype   acc_ref: (tm, tn) f32 scratch
    k = pl.program_id(2)

    @pl.when(k == 0)
    def _():
        # Fold the bias into the accumulator init: replaces the zero-init we
        # would pay anyway and removes the finalize broadcast-add pass.
        acc_ref[...] = jnp.broadcast_to(b_ref[...], acc_ref.shape)

    acc_ref[...] += jnp.dot(
        x_ref[...], w_ref[...], preferred_element_type=jnp.float32
    )

    @pl.when(k == pl.num_programs(2) - 1)
    def _():
        o_ref[...] = acc_ref[...].astype(o_ref.dtype)


class PallasLinear:
    """y = x @ W^T + b.  Weight/bias are cast + padded once at construction."""

    def __init__(
        self,
        weight_out_in,          # (out_features, in_features), PyTorch layout
        bias,                   # (out_features,)
        *,
        tile_m=1024,
        tile_n=1024,
        tile_k=1024,
        compute_dtype=jnp.bfloat16,
    ):
        self.N = int(weight_out_in.shape[0])
        self.K = int(weight_out_in.shape[1])
        self.compute_dtype = compute_dtype
        self.tile_m = tile_m

        # The weight-dim tile plan is fixed at init so the weight/bias can be
        # cast and zero-padded exactly once (no per-forward HBM pass over W).
        self.tn = min(tile_n, _round_up(self.N, 128))
        self.tk = min(tile_k, _round_up(self.K, 128))
        self.Np = _round_up(self.N, self.tn)
        self.Kp = _round_up(self.K, self.tk)

        w_t = jnp.transpose(weight_out_in)              # (K, N) for the kernel
        # Keep f32 copies only for the tiny-shape fallback path.
        self._w_f32 = w_t
        self._b_f32 = bias
        self.w_p = jnp.pad(
            w_t.astype(compute_dtype),
            ((0, self.Kp - self.K), (0, self.Np - self.N)),
        )
        self.b_p = jnp.pad(
            bias.astype(jnp.float32), ((0, self.Np - self.N),)
        ).reshape(1, self.Np)

    def __call__(self, x2d, *, out_dtype=None):
        M, K = x2d.shape
        assert K == self.K
        out_dtype = out_dtype if out_dtype is not None else x2d.dtype

        # Small-problem fallback: rounding e.g. 16x32x32 up to 128^3 wastes
        # >=16x MXU work plus pad copies; XLA's fused dot wins for tiny layers.
        if self.N < 128 or self.K < 128 or M < 8:
            y = jnp.dot(x2d.astype(jnp.float32), self._w_f32) + self._b_f32
            return y.astype(out_dtype)

        tn, tk, Np, Kp = self.tn, self.tk, self.Np, self.Kp
        tm = min(self.tile_m, _round_up(M, 128))
        Mp = _round_up(M, tm)

        grid_m, grid_n = Mp // tm, Np // tn
        # v7x shards "parallel" axes across its 2 TensorCores: if both parallel
        # axes collapse to 1, split one (when the problem is big enough) so
        # both cores get work.  Np stays a multiple of tn after halving.
        if grid_m == 1 and grid_n == 1:
            if Mp >= 256:
                tm = _round_up(Mp // 2, 128)
                Mp = _round_up(M, tm)
                grid_m = Mp // tm
            elif tn >= 256 and tn % 256 == 0:
                tn = tn // 2
                grid_n = Np // tn
        grid_k = Kp // tk
        grid = (grid_m, grid_n, grid_k)

        # Skip the activation pad/cast when it is a no-op.
        if (Mp, Kp) == (M, K) and x2d.dtype == self.compute_dtype:
            x_p = x2d
        else:
            x_p = jnp.pad(
                x2d.astype(self.compute_dtype), ((0, Mp - M), (0, Kp - K))
            )

        cdt = jnp.dtype(self.compute_dtype).itemsize
        odt = jnp.dtype(out_dtype).itemsize
        # Double-buffered x/w/bias/out tiles + resident f32 accumulator.
        footprint = (
            2 * tm * tk * cdt
            + 2 * tk * tn * cdt
            + 2 * tn * 4
            + tm * tn * 4
            + 2 * tm * tn * odt
        )
        # Cap at 64 MiB so the same config is safe on v7x (64 MiB VMEM/TC).
        vmem_limit = int(
            min(64 * 1024 * 1024, max(32 * 1024 * 1024, int(footprint * 1.5)))
        )

        cost = pl.CostEstimate(
            flops=2 * Mp * Kp * Np,
            transcendentals=0,
            bytes_accessed=(
                grid_n * Mp * Kp * cdt      # x stripe re-streamed per N-stripe
                + grid_m * Kp * Np * cdt    # weight re-streamed per M-stripe
                + grid_m * Np * 4           # bias re-read per M-stripe
                + Mp * Np * odt             # output writeback
            ),
        )

        y_p = pl.pallas_call(
            _linear_kernel,
            out_shape=jax.ShapeDtypeStruct((Mp, Np), out_dtype),
            grid_spec=pltpu.PrefetchScalarGridSpec(
                num_scalar_prefetch=0,
                grid=grid,
                in_specs=[
                    pl.BlockSpec((tm, tk), lambda i, j, k: (i, k)),  # x tile
                    pl.BlockSpec((tk, tn), lambda i, j, k: (k, j)),  # W tile
                    pl.BlockSpec((1, tn), lambda i, j, k: (0, j)),   # bias tile
                ],
                out_specs=pl.BlockSpec((tm, tn), lambda i, j, k: (i, j)),
                scratch_shapes=[pltpu.VMEM((tm, tn), jnp.float32)],
            ),
            compiler_params=pltpu.CompilerParams(
                dimension_semantics=("parallel", "parallel", "arbitrary"),
                vmem_limit_bytes=vmem_limit,
            ),
            cost_estimate=cost,
        )(x_p, self.w_p, self.b_p)

        return y_p[:M, : self.N]


# ------------------------ ExpertContainer (JAX side) ------------------------
class ExpertContainerJax:
    """Minimal JAX mirror of mttl's ExpertContainer dispatch semantics.

    Holds a base `layer` (Pallas Linear) and a dict of expert_infos.  The
    forward dispatches exactly like the PyTorch module: if there are no
    experts, or the container is disabled, it runs the base layer (Pallas
    kernel).  The routed path (`container_forward`) is abstract upstream.
    """

    def __init__(self, weight_out_in, bias):
        self._linear = PallasLinear(weight_out_in, bias)
        self._enabled = True
        self.expert_infos = {}
        self._default_expert_name = None

    def disable(self):
        self._enabled = False

    def enable(self):
        self._enabled = True

    def __len__(self):
        return len(self.expert_infos)

    def layer(self, x):
        # x: (batch, seq, hidden) -> (batch, seq, out)
        batch, seq, hidden = x.shape
        x2d = x.reshape(batch * seq, hidden)
        y2d = self._linear(x2d)
        return y2d.reshape(batch, seq, self._linear.N)

    def container_forward(self, x, **kwargs):
        # TODO(synk): container_forward is @abstractmethod in the base class
        # (expert-specific, e.g. LoRAExpertContainer); no base semantics exist.
        raise NotImplementedError("container_forward is abstract in ExpertContainer")

    def forward(self, x, **kwargs):
        if not len(self) or not self._enabled:
            return self.layer(x)
        return self.container_forward(x, **kwargs)


# --------------------------------- main ---------------------------------
if __name__ == "__main__":
    key = jax.random.PRNGKey(0)
    k_x, k_w, k_b = jax.random.split(key, 3)

    # Small, lane-aligned demo shapes that still exercise the Pallas path.
    batch, seq, hidden, out_features = 2, 8, 128, 128

    x = jax.random.normal(k_x, (batch, seq, hidden), dtype=jnp.float32)
    # Deterministic synthetic nn.Linear params (PyTorch layout: (out, in)).
    weight = jax.random.normal(k_w, (out_features, hidden), dtype=jnp.float32) * 0.05
    bias = jax.random.normal(k_b, (out_features,), dtype=jnp.float32) * 0.05

    container = ExpertContainerJax(weight, bias)

    # No experts added and container enabled -> forward() == layer(x) (Pallas).
    y = container.forward(x)
    y = jax.block_until_ready(y)

    # Reference check against plain JAX linear (f32).  The kernel uses bf16
    # matmul operands with f32 accumulation, so allow bf16-level tolerance.
    y_ref = jnp.einsum("bsk,ok->bso", x, weight) + bias
    assert y.shape == (batch, seq, out_features)
    assert jnp.allclose(y, y_ref, atol=2e-2, rtol=2e-2), (
        float(jnp.max(jnp.abs(y - y_ref)))
    )

    # Disabled path also dispatches to the base layer (same result).
    container.disable()
    y_disabled = jax.block_until_ready(container.forward(x))
    assert jnp.allclose(y_disabled, y, atol=1e-6)

    print("KERNEL_OK")
</pallas_src>

<mosaic_0001>
module attributes {stable_mosaic.version = 11 : i64} {
  func.func @_linear_kernel(%arg0: i32, %arg1: i32, %arg2: i32, %arg3: memref<128x128xbf16, #tpu.memory_space<vmem>>, %arg4: memref<128x128xbf16, #tpu.memory_space<vmem>>, %arg5: memref<1x128xf32, #tpu.memory_space<vmem>>, %arg6: memref<128x128xf32, #tpu.memory_space<vmem>>, %arg7: memref<128x128xf32, #tpu.memory_space<vmem>>) attributes {dimension_semantics = [#tpu.dimension_semantics<parallel>, #tpu.dimension_semantics<parallel>, #tpu.dimension_semantics<arbitrary>], iteration_bounds = array<i64: 1, 1, 1>, scalar_prefetch = 0 : i64, scratch_operands = 1 : i64, tpu.core_type = #tpu.core_type<tc>, window_params = [{transform_indices = @transform_0, window_bounds = array<i64: 128, 128>}, {transform_indices = @transform_1, window_bounds = array<i64: 128, 128>}, {transform_indices = @transform_2, window_bounds = array<i64: 1, 128>}, {transform_indices = @transform_3, window_bounds = array<i64: 128, 128>}]} {
    %c0_i32 = arith.constant 0 : i32
    %0 = arith.cmpi eq, %arg2, %c0_i32 : i32
    %1 = arith.extui %0 : i1 to i32
    %c0_i32_0 = arith.constant 0 : i32
    %2 = arith.cmpi ne, %1, %c0_i32_0 : i32
    scf.if %2 {
      %c0_10 = arith.constant 0 : index
      %c0_11 = arith.constant 0 : index
      %12 = vector.load %arg5[%c0_10, %c0_11] : memref<1x128xf32, #tpu.memory_space<vmem>>, vector<1x128xf32>
      %13 = vector.shape_cast %12 : vector<1x128xf32> to vector<1x128xf32>
      %14 = vector.broadcast %13 : vector<1x128xf32> to vector<128x128xf32>
      %c0_12 = arith.constant 0 : index
      %c0_13 = arith.constant 0 : index
      %15 = vector.load %arg7[%c0_12, %c0_13] : memref<128x128xf32, #tpu.memory_space<vmem>>, vector<128x128xf32>
      tpu.vector_store %arg7[%c0_12, %c0_13], %14 {strides = array<i32>} : memref<128x128xf32, #tpu.memory_space<vmem>>, vector<128x128xf32>,
    } else {
    }
    %c0 = arith.constant 0 : index
    %c0_1 = arith.constant 0 : index
    %3 = vector.load %arg7[%c0, %c0_1] : memref<128x128xf32, #tpu.memory_space<vmem>>, vector<128x128xf32>
    %c0_2 = arith.constant 0 : index
    %c0_3 = arith.constant 0 : index
    %4 = vector.load %arg3[%c0_2, %c0_3] : memref<128x128xbf16, #tpu.memory_space<vmem>>, vector<128x128xbf16>
    %c0_4 = arith.constant 0 : index
    %c0_5 = arith.constant 0 : index
    %5 = vector.load %arg4[%c0_4, %c0_5] : memref<128x128xbf16, #tpu.memory_space<vmem>>, vector<128x128xbf16>
    %cst = arith.constant dense<0.000000e+00> : vector<128x128xf32>
    %6 = tpu.matmul %4, %5, %cst {dimension_numbers = #tpu.dot_dimension_numbers<[1], [0], [0], [1], [0, 0, 1, 1], [], []>} : vector<128x128xbf16>, vector<128x128xbf16>, vector<128x128xf32> -> vector<128x128xf32>
    %7 = arith.addf %3, %6 : vector<128x128xf32>
    %c0_6 = arith.constant 0 : index
    %c0_7 = arith.constant 0 : index
    %8 = vector.load %arg7[%c0_6, %c0_7] : memref<128x128xf32, #tpu.memory_space<vmem>>, vector<128x128xf32>
    tpu.vector_store %arg7[%c0_6, %c0_7], %7 {strides = array<i32>} : memref<128x128xf32, #tpu.memory_space<vmem>>, vector<128x128xf32>,
    %c0_i32_8 = arith.constant 0 : i32
    %9 = arith.cmpi eq, %arg2, %c0_i32_8 : i32
    %10 = arith.extui %9 : i1 to i32
    %c0_i32_9 = arith.constant 0 : i32
    %11 = arith.cmpi ne, %10, %c0_i32_9 : i32
    scf.if %11 {
      %c0_10 = arith.constant 0 : index
      %c0_11 = arith.constant 0 : index
      %12 = vector.load %arg7[%c0_10, %c0_11] : memref<128x128xf32, #tpu.memory_space<vmem>>, vector<128x128xf32>
      %c0_12 = arith.constant 0 : index
      %c0_13 = arith.constant 0 : index
      %13 = vector.load %arg6[%c0_12, %c0_13] : memref<128x128xf32, #tpu.memory_space<vmem>>, vector<128x128xf32>
      tpu.vector_store %arg6[%c0_12, %c0_13], %12 {strides = array<i32>} : memref<128x128xf32, #tpu.memory_space<vmem>>, vector<128x128xf32>,
    } else {
    }
    return
  }
  func.func @transform_0(%arg0: i32, %arg1: i32, %arg2: i32) -> (i32, i32) {
    %c0_i32 = arith.constant 0 : i32
    return %arg0, %arg2 : i32, i32
  }
  func.func @transform_1(%arg0: i32, %arg1: i32, %arg2: i32) -> (i32, i32) {
    %c0_i32 = arith.constant 0 : i32
    return %arg2, %arg1 : i32, i32
  }
  func.func @transform_2(%arg0: i32, %arg1: i32, %arg2: i32) -> (i32, i32) {
    %c0_i32 = arith.constant 0 : i32
    %c0_i32_0 = arith.constant 0 : i32
    return %c0_i32, %arg1 : i32, i32
  }
  func.func @transform_3(%arg0: i32, %arg1: i32, %arg2: i32) -> (i32, i32) {
    %c0_i32 = arith.constant 0 : i32
    return %arg0, %arg1 : i32, i32
  }
}

</mosaic_0001>

<bundles_post_ra>
// kernel: tpu_custom_call.1
= control target key start
LH: loop header
LB: loop body
LE: loop exit
PB: predicated region body
PF: predicated region fallthrough
CT: control target
= control target key end

     0   :  { %8 = vsyncpa [#allocation4], 0  ;;  %s606_s0 = inlined_call_operand.hbm [shape: bf16[128,128], index: 0, kind: input, shape index: {}]   ;;  %s607_s1 = inlined_call_operand.hbm [shape: bf16[128,128], index: 1, kind: input, shape index: {}]   ;;  %s608_s2 = inlined_call_operand.vmem [shape: f32[1,128], index: 2, kind: input, shape index: {}]   ;;  %s609_s3 = inlined_call_operand.hbm [shape: f32[128,128], index: 3, kind: output, shape index: {}]  }
   0x1   :  { %9 = vsyncpa [#allocation7], 0 }
   0x2   :  { %10 = vsyncpa [#allocation5], 0  ;;  %s567_s12 = smov [#allocation3]  }
   0x3   :  { %s16_s13 = sshll.u32 %s567_s12, 4  ;;  %s17_s13 = int_to_ptr.vmem [resolvable:$true] %s16_s13 }
   0x4   :  { %s509_s14 = scalar_lea.vmem %s17_s13, 1024  ;;  %p514_p1 = scmp.lt.s32.totalorder %s17_s13, %s17_s13 }
   0x5   :  { %p510_p0 = scmp.ne.s32.totalorder %s17_s13, %s509_s14  ;;  %p515_p2 = scmp.lt.s32.totalorder %s509_s14, %s509_s14 }
   0x7   :  { %p516_p3 = por %p515_p2, %p514_p1 }
   0x9   :  { %p517_p4 = pnand %p516_p3, %p510_p0 }
   0xb   :  { %520 = shalt.err (!%p517_p4)
}
   0xc   :  { %s568_s15 = smov 64   ;;  %s569_s16 = smov 4  }
   0xd   :  { %22 = dma.hbm_to_vmem [thread:$0]  %s606_s0, 1024, %s17_s13, [#allocation4], %s568_s15, %s568_s15, %s569_s16  }
   0xe   :  { %s570_s19 = smov [#allocation6]  }
   0xf   :  { %s28_s20 = sshll.u32 %s570_s19, 4  ;;  %s29_s20 = int_to_ptr.vmem [resolvable:$true] %s28_s20 }
  0x10   :  { %s529_s21 = scalar_lea.vmem %s29_s20, 1024  ;;  %p534_p6 = scmp.lt.s32.totalorder %s29_s20, %s29_s20 }
  0x11   :  { %p530_p5 = scmp.ne.s32.totalorder %s29_s20, %s529_s21  ;;  %p535_p7 = scmp.lt.s32.totalorder %s529_s21, %s529_s21 }
  0x13   :  { %p536_p8 = por %p535_p7, %p534_p6 }
  0x15   :  { %p537_p9 = pnand %p536_p8, %p530_p5 }
  0x17   :  { %540 = shalt.err (!%p537_p9)
}
  0x18   :  { %34 = dma.hbm_to_vmem [thread:$0]  %s607_s1, 1024, %s29_s20, [#allocation7], %s568_s15, %s568_s15, %s569_s16  }
  0x19   :  { %561 = dma.done.wait [#allocation4], 1024  }
  0x1a   :  { %562 = vsyncadd [#allocation4], 4294966272 }
  0x1b   :  { %563 = dma.done.wait [#allocation7], 1024  }
  0x1c   :  { %564 = vsyncadd [#allocation7], 4294966272  ;;  %v485_v0 = vld [vmem:[#allocation6 + $0x38] sm:$0xff]   ;;  %v486_v1 = vld [vmem:[#allocation6 + $0x30] sm:$0xff]  }
  0x1d   :  { %430 = vmatprep.subr.bf16.mxu0 %v485_v0  ;;  %462 = vmatprep.subr.bf16.mxu1 %v485_v0  ;;  %v487_v2 = vld [vmem:[#allocation6 + $0x28] sm:$0xff]   ;;  %v488_v3 = vld [vmem:[#allocation6 + $0x20] sm:$0xff]   ;;  %v489_v6 = vld [vmem:[#allocation6 + $0x18] sm:$0xff]  }
  0x1e   :  { %431 = vmatpush3.bf16.msra.mxu0 %v485_v0  ;;  %470 = vmatpush3.bf16.msra.mxu1 %v485_v0  ;;  %v493_v4 = vld [vmem:[#allocation3] sm:$0xff]   ;;  %v490_v7 = vld [vmem:[#allocation6 + $0x10] sm:$0xff]   ;;  %v491_v8 = vld [vmem:[#allocation6 + $0x8] sm:$0xff]  }
  0x1f   :  { %432 = vmatprep.subr.bf16.mxu0 %v486_v1  ;;  %463 = vmatprep.subr.bf16.mxu1 %v486_v1  ;;  %v494_v5 = vld [vmem:[#allocation3 + $0x20] sm:$0xff]   ;;  %v495_v10 = vld [vmem:[#allocation3 + $0x8] sm:$0xff]   ;;  %v497_v12 = vld [vmem:[#allocation3 + $0x10] sm:$0xff]  }
  0x20   :  { %446 = vmatprep.mubr.bf16.mxu0 %v493_v4  ;;  %454 = vmatprep.mubr.bf16.mxu1 %v494_v5  ;;  %v492_v9 = vld [vmem:[#allocation6] sm:$0xff]   ;;  %v496_v11 = vld [vmem:[#allocation3 + $0x28] sm:$0xff]   ;;  %v498_v13 = vld [vmem:[#allocation3 + $0x30] sm:$0xff]  }
  0x21   :  { %v499_v14 = vld [vmem:[#allocation3 + $0x18] sm:$0xff]   ;;  %v397_v16 = vld [vmem:[%s608_s2] ss:$0 sm:$0xff]  ;;  %s571_s2 = smov [#allocation8]  }
  0x22   :  { %433 = vmatpush3.bf16.msra.mxu0 %v486_v1  ;;  %471 = vmatpush3.bf16.msra.mxu1 %v486_v1  ;;  %v500_v15 = vld [vmem:[#allocation3 + $0x38] sm:$0xff]   ;;  %s384_s24 = sshll.u32 %s571_s2, 4  ;;  %s385_s24 = int_to_ptr.vmem [resolvable:$true] %s384_s24 }
  0x23   :  { %434 = vmatprep.subr.bf16.mxu0 %v487_v2  ;;  %464 = vmatprep.subr.bf16.mxu1 %v487_v2  ;;  %s541_s25 = scalar_lea.vmem %s385_s24, 2048  ;;  %p546_p11 = scmp.lt.s32.totalorder %s385_s24, %s385_s24 }
  0x24   :  { %p542_p10 = scmp.ne.s32.totalorder %s385_s24, %s541_s25  ;;  %p547_p12 = scmp.lt.s32.totalorder %s541_s25, %s541_s25 }
  0x26   :  { %435 = vmatpush3.bf16.msra.mxu0 %v487_v2  ;;  %472 = vmatpush3.bf16.msra.mxu1 %v487_v2  ;;  %p548_p13 = por %p547_p12, %p546_p11 }
  0x27   :  { %436 = vmatprep.subr.bf16.mxu0 %v488_v3  ;;  %465 = vmatprep.subr.bf16.mxu1 %v488_v3 }
  0x28   :  { %p549_p0 = pnand %p548_p13, %p542_p10 }
  0x2a   :  { %437 = vmatpush3.bf16.msra.mxu0 %v488_v3  ;;  %473 = vmatpush3.bf16.msra.mxu1 %v488_v3 }
  0x2b   :  { %438 = vmatprep.subr.bf16.mxu0 %v489_v6  ;;  %466 = vmatprep.subr.bf16.mxu1 %v489_v6 }
  0x2e   :  { %439 = vmatpush3.bf16.msra.mxu0 %v489_v6  ;;  %474 = vmatpush3.bf16.msra.mxu1 %v489_v6 }
  0x2f   :  { %440 = vmatprep.subr.bf16.mxu0 %v490_v7  ;;  %467 = vmatprep.subr.bf16.mxu1 %v490_v7 }
  0x32   :  { %441 = vmatpush3.bf16.msra.mxu0 %v490_v7  ;;  %475 = vmatpush3.bf16.msra.mxu1 %v490_v7 }
  0x33   :  { %442 = vmatprep.subr.bf16.mxu0 %v491_v8  ;;  %468 = vmatprep.subr.bf16.mxu1 %v491_v8 }
  0x36   :  { %443 = vmatpush3.bf16.msra.mxu0 %v491_v8  ;;  %476 = vmatpush3.bf16.msra.mxu1 %v491_v8 }
  0x37   :  { %444 = vmatprep.subr.bf16.mxu0 %v492_v9  ;;  %469 = vmatprep.subr.bf16.mxu1 %v492_v9 }
  0x3a   :  { %445 = vmatpush3.bf16.msra.mxu0 %v492_v9  ;;  %477 = vmatpush3.bf16.msra.mxu1 %v492_v9 }
  0x3d   :  { %447 = vmatmul.mubr.bf16.vlgmr.msra.gmra.mxu0 %v495_v10  ;;  %455 = vmatmul.mubr.bf16.vlgmr.msra.gmra.mxu1 %v496_v11 }
  0x3e   :  { %450 = vmatprep.mubr.bf16.mxu0 %v497_v12  ;;  %458 = vmatprep.mubr.bf16.mxu1 %v498_v13 }
  0x45   :  { %451 = vmatmul.mubr.bf16.gmra.mxu0 %v499_v14  ;;  %459 = vmatmul.mubr.bf16.gmra.mxu1 %v500_v15 }
  0xfd   :  { %v448_v17 = vpop.f32.mrf.mxu0  ;;  %v456_v18 = vpop.f32.mrf.mxu1 }
  0xfe   :  { %v314_v19 = vadd.f32 %v448_v17, %v397_v16  ;;  %v322_v20 = vadd.f32 %v456_v18, %v397_v16 }
  0xff   :  { %v249_v21 = vpop.f32.mrf.mxu0  ;;  %v281_v22 = vpop.f32.mrf.mxu1 }
 0x100   :  { %365 = vst [vmem:[#allocation8 + $0x10] sm:$0xff] %v314_v19  ;;  %373 = vst [vmem:[#allocation8 + $0x50] sm:$0xff] %v322_v20  ;;  %v312_v23 = vadd.f32 %v397_v16, %v249_v21  ;;  %v320_v24 = vadd.f32 %v397_v16, %v281_v22 }
 0x101   :  { %v449_v25 = vpop.f32.mrf.mxu0  ;;  %v457_v26 = vpop.f32.mrf.mxu1 }
 0x102   :  { %363 = vst [vmem:[#allocation8] sm:$0xff] %v312_v23  ;;  %371 = vst [vmem:[#allocation8 + $0x40] sm:$0xff] %v320_v24  ;;  %v315_v27 = vadd.f32 %v449_v25, %v397_v16  ;;  %v323_v28 = vadd.f32 %v457_v26, %v397_v16 }
 0x103   :  { %v252_v29 = vpop.f32.mrf.mxu0  ;;  %v284_v30 = vpop.f32.mrf.mxu1 }
 0x104   :  { %366 = vst [vmem:[#allocation8 + $0x18] sm:$0xff] %v315_v27  ;;  %374 = vst [vmem:[#allocation8 + $0x58] sm:$0xff] %v323_v28  ;;  %v313_v31 = vadd.f32 %v397_v16, %v252_v29  ;;  %v321_v32 = vadd.f32 %v397_v16, %v284_v30 }
 0x105   :  { %v452_v33 = vpop.f32.mrf.mxu0  ;;  %v460_v34 = vpop.f32.mrf.mxu1 }
 0x106   :  { %364 = vst [vmem:[#allocation8 + $0x8] sm:$0xff] %v313_v31  ;;  %372 = vst [vmem:[#allocation8 + $0x48] sm:$0xff] %v321_v32  ;;  %v318_v35 = vadd.f32 %v452_v33, %v397_v16  ;;  %v326_v36 = vadd.f32 %v460_v34, %v397_v16 }
 0x107   :  { %v265_v37 = vpop.f32.mrf.mxu0  ;;  %v297_v38 = vpop.f32.mrf.mxu1 }
 0x108   :  { %369 = vst [vmem:[#allocation8 + $0x30] sm:$0xff] %v318_v35  ;;  %377 = vst [vmem:[#allocation8 + $0x70] sm:$0xff] %v326_v36  ;;  %v316_v39 = vadd.f32 %v397_v16, %v265_v37  ;;  %v324_v40 = vadd.f32 %v397_v16, %v297_v38 }
 0x109   :  { %v453_v41 = vpop.f32.mrf.mxu0  ;;  %v461_v42 = vpop.f32.mrf.mxu1 }
 0x10a   :  { %367 = vst [vmem:[#allocation8 + $0x20] sm:$0xff] %v316_v39  ;;  %375 = vst [vmem:[#allocation8 + $0x60] sm:$0xff] %v324_v40  ;;  %v319_v43 = vadd.f32 %v453_v41, %v397_v16  ;;  %v327_v44 = vadd.f32 %v461_v42, %v397_v16 }
 0x10b   :  { %v268_v45 = vpop.f32.mrf.mxu0  ;;  %v300_v46 = vpop.f32.mrf.mxu1 }
 0x10c   :  { %370 = vst [vmem:[#allocation8 + $0x38] sm:$0xff] %v319_v43  ;;  %378 = vst [vmem:[#allocation8 + $0x78] sm:$0xff] %v327_v44  ;;  %v317_v47 = vadd.f32 %v397_v16, %v268_v45  ;;  %v325_v48 = vadd.f32 %v397_v16, %v300_v46 }
 0x10e   :  { %368 = vst [vmem:[#allocation8 + $0x28] sm:$0xff] %v317_v47  ;;  %376 = vst [vmem:[#allocation8 + $0x68] sm:$0xff] %v325_v48 }
 0x10f   :  { %552 = shalt.err (!%p549_p0)
}
 0x110   :  { %s572_s26 = smov 128   ;;  %s573_s27 = smov 8  }
 0x111   :  { %390 = dma.vmem_to_hbm [thread:$0]  %s385_s24, 2048, %s609_s3, [#allocation5], %s572_s26, %s572_s26, %s573_s27  }
 0x112   :  { %565 = dma.done.wait [#allocation5], 2048  }
 0x113   :  { %566 = vsyncadd [#allocation5], 4294965248 }
 0x114   :  { %394 = vsyncpa [#allocation4], 1 }
 0x115   :  { %395 = vsyncpa [#allocation7], 1 }
 0x116   :  { %396 = vsyncpa [#allocation5], 1 }

</bundles_post_ra>
